<compile_context>
chip_gen: v7x
topology: tpu7x:2x2x1
jax: 0.10.0
libtpu: 0.0.40
codegen_flags: <defaults>
</compile_context>

<pallas_src>
import functools

import jax
import jax.numpy as jnp
from jax import lax
from jax.experimental import pallas as pl
from jax.experimental.pallas import tpu as pltpu

# ---- model hyperparameters (small, consistent with the BERT script) ----
VOCAB_SIZE = 32
MAXLEN = 16
N_SEGMENTS = 2
D_MODEL = 32
LN_EPS = 1e-5  # PyTorch nn.LayerNorm default


def embedding_kernel(tok_ids_ref,          # SMEM  (B*S,)      int32 (scalar prefetch)
                     seg_ref,              # VMEM  (1, S, 1)   int32
                     pos_ref,              # VMEM  (S, D_PAD)  f32   rows [0, S) of pos table
                     seg_tab_ref,          # VMEM  (2, D_PAD)  f32
                     gamma_ref,            # VMEM  (1, D_PAD)  f32   zero-padded past d_model
                     beta_ref,             # VMEM  (1, D_PAD)  f32   zero-padded past d_model
                     tok_hbm_ref,          # HBM   (V, D_PAD)  f32   (memory_space=pl.ANY)
                     out_ref,              # VMEM  (1, S, D_PAD) f32
                     tok_rows_ref,         # VMEM scratch (S, D_PAD) f32
                     dma_sems,             # DMA semaphores (S,)
                     *, d_model, eps):
    s_blk, d_pad = pos_ref.shape
    vocab = tok_hbm_ref.shape[0]
    base = pl.program_id(0) * s_blk

    # --- 1) token gather: one row DMA per token, all issued up front ------------
    def _start(r, carry):
        tok_id = jnp.clip(tok_ids_ref[base + r], 0, vocab - 1)   # clamp: no OOB DMA
        pltpu.make_async_copy(tok_hbm_ref.at[pl.ds(tok_id, 1), :],
                              tok_rows_ref.at[pl.ds(r, 1), :],
                              dma_sems.at[r]).start()
        return carry
    lax.fori_loop(0, s_blk, _start, 0, unroll=True)

    # --- 2) overlap with the DMAs: pos tile add + 2-way segment select (VPU) ----
    seg_is_one = (seg_ref[0] != 0).astype(jnp.float32)            # (S, 1)
    seg_emb = seg_tab_ref[0:1, :] + seg_is_one * (seg_tab_ref[1:2, :] - seg_tab_ref[0:1, :])
    pos_plus_seg = pos_ref[...] + seg_emb                         # (S, D_PAD)

    # --- 3) wait for the gathered token rows ------------------------------------
    def _wait(r, carry):
        pltpu.make_async_copy(tok_hbm_ref.at[pl.ds(0, 1), :],
                              tok_rows_ref.at[pl.ds(r, 1), :],
                              dma_sems.at[r]).wait()
        return carry
    lax.fori_loop(0, s_blk, _wait, 0, unroll=True)

    emb = tok_rows_ref[...] + pos_plus_seg                        # (S, D_PAD) f32

    # --- 4) LayerNorm over the true d_model lanes (padding lanes are zero) ------
    inv_d = 1.0 / d_model
    lane_ok = lax.broadcasted_iota(jnp.int32, (s_blk, d_pad), 1) < d_model
    mean = jnp.sum(emb, axis=-1, keepdims=True) * inv_d           # pads contribute 0
    centered = jnp.where(lane_ok, emb - mean, 0.0)
    var = jnp.sum(centered * centered, axis=-1, keepdims=True) * inv_d
    out = centered * lax.rsqrt(var + eps) * gamma_ref[...] + beta_ref[...]
    out_ref[0] = out.astype(out_ref.dtype)


def bert_embedding(x, seg, tok_table, pos_table, seg_table, gamma, beta, eps=LN_EPS):
    """x, seg: int32 [B, S]. Returns float32 [B, S, D]."""
    B, S = x.shape
    V, D = tok_table.shape
    assert S % 8 == 0, "sequence row-block must be a multiple of 8 sublanes"
    assert pos_table.shape[0] >= S and seg_table.shape[0] == 2
    d_pad = ((D + 127) // 128) * 128                      # lane-dense hidden width

    pad2 = lambda t: jnp.pad(t.astype(jnp.float32), ((0, 0), (0, d_pad - D)))
    tok_p = pad2(tok_table)                               # stays HBM-resident
    pos_p = pad2(pos_table)
    seg_p = pad2(seg_table)
    gamma_p = jnp.pad(gamma.astype(jnp.float32), (0, d_pad - D)).reshape(1, d_pad)
    beta_p = jnp.pad(beta.astype(jnp.float32), (0, d_pad - D)).reshape(1, d_pad)

    tok_ids = x.reshape(B * S).astype(jnp.int32)          # scalar prefetch -> SMEM
    seg_ids = seg.reshape(B, S, 1).astype(jnp.int32)

    grid_spec = pltpu.PrefetchScalarGridSpec(
        num_scalar_prefetch=1,
        grid=(B,),                                        # one (S, D) row-block per step
        in_specs=[
            pl.BlockSpec((1, S, 1), lambda b, ids: (b, 0, 0)),                  # seg ids
            pl.BlockSpec((S, d_pad), lambda b, ids: (0, 0)),                    # pos rows [0, S)
            pl.BlockSpec((seg_table.shape[0], d_pad), lambda b, ids: (0, 0)),   # seg table
            pl.BlockSpec((1, d_pad), lambda b, ids: (0, 0)),                    # gamma
            pl.BlockSpec((1, d_pad), lambda b, ids: (0, 0)),                    # beta
            pl.BlockSpec(memory_space=pl.ANY),                                  # token table (HBM)
        ],
        out_specs=pl.BlockSpec((1, S, d_pad), lambda b, ids: (b, 0, 0)),
        scratch_shapes=[
            pltpu.VMEM((S, d_pad), jnp.float32),          # gathered token rows
            pltpu.SemaphoreType.DMA((S,)),                # one sem per row DMA
        ],
    )

    out = pl.pallas_call(
        functools.partial(embedding_kernel, d_model=D, eps=eps),
        grid_spec=grid_spec,
        out_shape=jax.ShapeDtypeStruct((B, S, d_pad), jnp.float32),
        compiler_params=pltpu.CompilerParams(
            dimension_semantics=("parallel",)),           # shard row-blocks across TCs (v7x)
    )(tok_ids, seg_ids, pos_p, seg_p, gamma_p, beta_p, tok_p)

    return out[..., :D]


if __name__ == "__main__":
    key = jax.random.PRNGKey(0)
    k_tok, k_pos, k_seg, k_x = jax.random.split(key, 4)

    # Deterministic parameter init (nn.Embedding default: N(0,1); LayerNorm: ones/zeros)
    tok_table = jax.random.normal(k_tok, (VOCAB_SIZE, D_MODEL), dtype=jnp.float32)
    pos_table = jax.random.normal(k_pos, (MAXLEN, D_MODEL), dtype=jnp.float32)
    seg_table = jax.random.normal(k_seg, (N_SEGMENTS, D_MODEL), dtype=jnp.float32)
    gamma = jnp.ones((D_MODEL,), dtype=jnp.float32)
    beta = jnp.zeros((D_MODEL,), dtype=jnp.float32)

    # Example inputs: batch=2, seq=8
    B, S = 2, 8
    x = jax.random.randint(k_x, (B, S), 0, VOCAB_SIZE, dtype=jnp.int32)
    seg = jnp.concatenate(
        [jnp.zeros((B, S // 2), jnp.int32), jnp.ones((B, S - S // 2), jnp.int32)],
        axis=1)

    out = bert_embedding(x, seg, tok_table, pos_table, seg_table, gamma, beta)
    out = jax.block_until_ready(out)

    # Pure-JAX reference check
    pos = jnp.broadcast_to(jnp.arange(S)[None, :], (B, S))
    emb_ref = tok_table[x] + pos_table[pos] + seg_table[seg]
    mean = emb_ref.mean(-1, keepdims=True)
    var = ((emb_ref - mean) ** 2).mean(-1, keepdims=True)
    ref = (emb_ref - mean) / jnp.sqrt(var + LN_EPS) * gamma + beta
    assert out.shape == (B, S, D_MODEL)
    assert jnp.allclose(out, ref, atol=1e-4, rtol=1e-4)

    print("KERNEL_OK")
</pallas_src>

<mosaic_0001>
module attributes {stable_mosaic.version = 11 : i64} {
  func.func @embedding_kernel(%arg0: i32, %arg1: memref<16xi32, #tpu.memory_space<smem>>, %arg2: memref<1x8x1xi32, #tpu.memory_space<vmem>>, %arg3: memref<8x128xf32, #tpu.memory_space<vmem>>, %arg4: memref<2x128xf32, #tpu.memory_space<vmem>>, %arg5: memref<1x128xf32, #tpu.memory_space<vmem>>, %arg6: memref<1x128xf32, #tpu.memory_space<vmem>>, %arg7: memref<32x128xf32, #tpu.memory_space<any>>, %arg8: memref<1x8x128xf32, #tpu.memory_space<vmem>>, %arg9: memref<8x128xf32, #tpu.memory_space<vmem>>, %arg10: memref<8x!tpu.dma_semaphore, #tpu.memory_space<semaphore_mem>>) attributes {dimension_semantics = [#tpu.dimension_semantics<parallel>], iteration_bounds = array<i64: 2>, scalar_prefetch = 1 : i64, scratch_operands = 2 : i64, tpu.core_type = #tpu.core_type<tc>, window_params = [{transform_indices = @transform_0, window_bounds = array<i64: 1, 8, 1>}, {transform_indices = @transform_1, window_bounds = array<i64: 8, 128>}, {pipeline_mode = #tpu.pipeline_mode<synchronous>, transform_indices = @transform_2, window_bounds = array<i64: 2, 128>}, {pipeline_mode = #tpu.pipeline_mode<synchronous>, transform_indices = @transform_3, window_bounds = array<i64: 1, 128>}, {pipeline_mode = #tpu.pipeline_mode<synchronous>, transform_indices = @transform_4, window_bounds = array<i64: 1, 128>}, {}, {transform_indices = @transform_6, window_bounds = array<i64: 1, 8, 128>}]} {
    %c8_i32 = arith.constant 8 : i32
    %0 = arith.muli %arg0, %c8_i32 : i32
    %c0_i32 = arith.constant 0 : i32
    %1 = arith.addi %0, %c0_i32 : i32
    %2 = arith.index_cast %1 : i32 to index
    %3 = memref.load %arg1[%2] : memref<16xi32, #tpu.memory_space<smem>>
    %c0_i32_0 = arith.constant 0 : i32
    %c31_i32 = arith.constant 31 : i32
    %4 = arith.maxsi %c0_i32_0, %3 : i32
    %5 = arith.minsi %c31_i32, %4 : i32
    %c0_i32_1 = arith.constant 0 : i32
    %6 = tpu.memref_slice %arg7[%5, %c0_i32_1] : memref<32x128xf32, #tpu.memory_space<any>> -> memref<1x128xf32, #tpu.memory_space<any>>
    %c0_i32_2 = arith.constant 0 : i32
    %7 = tpu.memref_slice %arg9[%c0_i32, %c0_i32_2] : memref<8x128xf32, #tpu.memory_space<vmem>> -> memref<1x128xf32, #tpu.memory_space<vmem>>
    %8 = tpu.memref_slice %arg10[%c0_i32] : memref<8x!tpu.dma_semaphore, #tpu.memory_space<semaphore_mem>> -> memref<1x!tpu.dma_semaphore, #tpu.memory_space<semaphore_mem>>
    %9 = tpu.memref_squeeze %8 : memref<1x!tpu.dma_semaphore, #tpu.memory_space<semaphore_mem>> -> memref<!tpu.dma_semaphore, #tpu.memory_space<semaphore_mem>>
    tpu.enqueue_dma source(%6 : memref<1x128xf32, #tpu.memory_space<any>>) target(%7 : memref<1x128xf32, #tpu.memory_space<vmem>>) target_semaphore(%9 : memref<!tpu.dma_semaphore, #tpu.memory_space<semaphore_mem>>)
    %c1_i32 = arith.constant 1 : i32
    %10 = arith.addi %0, %c1_i32 : i32
    %11 = arith.index_cast %10 : i32 to index
    %12 = memref.load %arg1[%11] : memref<16xi32, #tpu.memory_space<smem>>
    %c0_i32_3 = arith.constant 0 : i32
    %c31_i32_4 = arith.constant 31 : i32
    %13 = arith.maxsi %c0_i32_3, %12 : i32
    %14 = arith.minsi %c31_i32_4, %13 : i32
    %c0_i32_5 = arith.constant 0 : i32
    %15 = tpu.memref_slice %arg7[%14, %c0_i32_5] : memref<32x128xf32, #tpu.memory_space<any>> -> memref<1x128xf32, #tpu.memory_space<any>>
    %c0_i32_6 = arith.constant 0 : i32
    %16 = tpu.memref_slice %arg9[%c1_i32, %c0_i32_6] : memref<8x128xf32, #tpu.memory_space<vmem>> -> memref<1x128xf32, #tpu.memory_space<vmem>>
    %17 = tpu.memref_slice %arg10[%c1_i32] : memref<8x!tpu.dma_semaphore, #tpu.memory_space<semaphore_mem>> -> memref<1x!tpu.dma_semaphore, #tpu.memory_space<semaphore_mem>>
    %18 = tpu.memref_squeeze %17 : memref<1x!tpu.dma_semaphore, #tpu.memory_space<semaphore_mem>> -> memref<!tpu.dma_semaphore, #tpu.memory_space<semaphore_mem>>
    tpu.enqueue_dma source(%15 : memref<1x128xf32, #tpu.memory_space<any>>) target(%16 : memref<1x128xf32, #tpu.memory_space<vmem>>) target_semaphore(%18 : memref<!tpu.dma_semaphore, #tpu.memory_space<semaphore_mem>>)
    %c2_i32 = arith.constant 2 : i32
    %19 = arith.addi %0, %c2_i32 : i32
    %20 = arith.index_cast %19 : i32 to index
    %21 = memref.load %arg1[%20] : memref<16xi32, #tpu.memory_space<smem>>
    %c0_i32_7 = arith.constant 0 : i32
    %c31_i32_8 = arith.constant 31 : i32
    %22 = arith.maxsi %c0_i32_7, %21 : i32
    %23 = arith.minsi %c31_i32_8, %22 : i32
    %c0_i32_9 = arith.constant 0 : i32
    %24 = tpu.memref_slice %arg7[%23, %c0_i32_9] : memref<32x128xf32, #tpu.memory_space<any>> -> memref<1x128xf32, #tpu.memory_space<any>>
    %c0_i32_10 = arith.constant 0 : i32
    %25 = tpu.memref_slice %arg9[%c2_i32, %c0_i32_10] : memref<8x128xf32, #tpu.memory_space<vmem>> -> memref<1x128xf32, #tpu.memory_space<vmem>>
    %26 = tpu.memref_slice %arg10[%c2_i32] : memref<8x!tpu.dma_semaphore, #tpu.memory_space<semaphore_mem>> -> memref<1x!tpu.dma_semaphore, #tpu.memory_space<semaphore_mem>>
    %27 = tpu.memref_squeeze %26 : memref<1x!tpu.dma_semaphore, #tpu.memory_space<semaphore_mem>> -> memref<!tpu.dma_semaphore, #tpu.memory_space<semaphore_mem>>
    tpu.enqueue_dma source(%24 : memref<1x128xf32, #tpu.memory_space<any>>) target(%25 : memref<1x128xf32, #tpu.memory_space<vmem>>) target_semaphore(%27 : memref<!tpu.dma_semaphore, #tpu.memory_space<semaphore_mem>>)
    %c3_i32 = arith.constant 3 : i32
    %28 = arith.addi %0, %c3_i32 : i32
    %29 = arith.index_cast %28 : i32 to index
    %30 = memref.load %arg1[%29] : memref<16xi32, #tpu.memory_space<smem>>
    %c0_i32_11 = arith.constant 0 : i32
    %c31_i32_12 = arith.constant 31 : i32
    %31 = arith.maxsi %c0_i32_11, %30 : i32
    %32 = arith.minsi %c31_i32_12, %31 : i32
    %c0_i32_13 = arith.constant 0 : i32
    %33 = tpu.memref_slice %arg7[%32, %c0_i32_13] : memref<32x128xf32, #tpu.memory_space<any>> -> memref<1x128xf32, #tpu.memory_space<any>>
    %c0_i32_14 = arith.constant 0 : i32
    %34 = tpu.memref_slice %arg9[%c3_i32, %c0_i32_14] : memref<8x128xf32, #tpu.memory_space<vmem>> -> memref<1x128xf32, #tpu.memory_space<vmem>>
    %35 = tpu.memref_slice %arg10[%c3_i32] : memref<8x!tpu.dma_semaphore, #tpu.memory_space<semaphore_mem>> -> memref<1x!tpu.dma_semaphore, #tpu.memory_space<semaphore_mem>>
    %36 = tpu.memref_squeeze %35 : memref<1x!tpu.dma_semaphore, #tpu.memory_space<semaphore_mem>> -> memref<!tpu.dma_semaphore, #tpu.memory_space<semaphore_mem>>
    tpu.enqueue_dma source(%33 : memref<1x128xf32, #tpu.memory_space<any>>) target(%34 : memref<1x128xf32, #tpu.memory_space<vmem>>) target_semaphore(%36 : memref<!tpu.dma_semaphore, #tpu.memory_space<semaphore_mem>>)
    %c4_i32 = arith.constant 4 : i32
    %37 = arith.addi %0, %c4_i32 : i32
    %38 = arith.index_cast %37 : i32 to index
    %39 = memref.load %arg1[%38] : memref<16xi32, #tpu.memory_space<smem>>
    %c0_i32_15 = arith.constant 0 : i32
    %c31_i32_16 = arith.constant 31 : i32
    %40 = arith.maxsi %c0_i32_15, %39 : i32
    %41 = arith.minsi %c31_i32_16, %40 : i32
    %c0_i32_17 = arith.constant 0 : i32
    %42 = tpu.memref_slice %arg7[%41, %c0_i32_17] : memref<32x128xf32, #tpu.memory_space<any>> -> memref<1x128xf32, #tpu.memory_space<any>>
    %c0_i32_18 = arith.constant 0 : i32
    %43 = tpu.memref_slice %arg9[%c4_i32, %c0_i32_18] : memref<8x128xf32, #tpu.memory_space<vmem>> -> memref<1x128xf32, #tpu.memory_space<vmem>>
    %44 = tpu.memref_slice %arg10[%c4_i32] : memref<8x!tpu.dma_semaphore, #tpu.memory_space<semaphore_mem>> -> memref<1x!tpu.dma_semaphore, #tpu.memory_space<semaphore_mem>>
    %45 = tpu.memref_squeeze %44 : memref<1x!tpu.dma_semaphore, #tpu.memory_space<semaphore_mem>> -> memref<!tpu.dma_semaphore, #tpu.memory_space<semaphore_mem>>
    tpu.enqueue_dma source(%42 : memref<1x128xf32, #tpu.memory_space<any>>) target(%43 : memref<1x128xf32, #tpu.memory_space<vmem>>) target_semaphore(%45 : memref<!tpu.dma_semaphore, #tpu.memory_space<semaphore_mem>>)
    %c5_i32 = arith.constant 5 : i32
    %46 = arith.addi %0, %c5_i32 : i32
    %47 = arith.index_cast %46 : i32 to index
    %48 = memref.load %arg1[%47] : memref<16xi32, #tpu.memory_space<smem>>
    %c0_i32_19 = arith.constant 0 : i32
    %c31_i32_20 = arith.constant 31 : i32
    %49 = arith.maxsi %c0_i32_19, %48 : i32
    %50 = arith.minsi %c31_i32_20, %49 : i32
    %c0_i32_21 = arith.constant 0 : i32
    %51 = tpu.memref_slice %arg7[%50, %c0_i32_21] : memref<32x128xf32, #tpu.memory_space<any>> -> memref<1x128xf32, #tpu.memory_space<any>>
    %c0_i32_22 = arith.constant 0 : i32
    %52 = tpu.memref_slice %arg9[%c5_i32, %c0_i32_22] : memref<8x128xf32, #tpu.memory_space<vmem>> -> memref<1x128xf32, #tpu.memory_space<vmem>>
    %53 = tpu.memref_slice %arg10[%c5_i32] : memref<8x!tpu.dma_semaphore, #tpu.memory_space<semaphore_mem>> -> memref<1x!tpu.dma_semaphore, #tpu.memory_space<semaphore_mem>>
    %54 = tpu.memref_squeeze %53 : memref<1x!tpu.dma_semaphore, #tpu.memory_space<semaphore_mem>> -> memref<!tpu.dma_semaphore, #tpu.memory_space<semaphore_mem>>
    tpu.enqueue_dma source(%51 : memref<1x128xf32, #tpu.memory_space<any>>) target(%52 : memref<1x128xf32, #tpu.memory_space<vmem>>) target_semaphore(%54 : memref<!tpu.dma_semaphore, #tpu.memory_space<semaphore_mem>>)
    %c6_i32 = arith.constant 6 : i32
    %55 = arith.addi %0, %c6_i32 : i32
    %56 = arith.index_cast %55 : i32 to index
    %57 = memref.load %arg1[%56] : memref<16xi32, #tpu.memory_space<smem>>
    %c0_i32_23 = arith.constant 0 : i32
    %c31_i32_24 = arith.constant 31 : i32
    %58 = arith.maxsi %c0_i32_23, %57 : i32
    %59 = arith.minsi %c31_i32_24, %58 : i32
    %c0_i32_25 = arith.constant 0 : i32
    %60 = tpu.memref_slice %arg7[%59, %c0_i32_25] : memref<32x128xf32, #tpu.memory_space<any>> -> memref<1x128xf32, #tpu.memory_space<any>>
    %c0_i32_26 = arith.constant 0 : i32
    %61 = tpu.memref_slice %arg9[%c6_i32, %c0_i32_26] : memref<8x128xf32, #tpu.memory_space<vmem>> -> memref<1x128xf32, #tpu.memory_space<vmem>>
    %62 = tpu.memref_slice %arg10[%c6_i32] : memref<8x!tpu.dma_semaphore, #tpu.memory_space<semaphore_mem>> -> memref<1x!tpu.dma_semaphore, #tpu.memory_space<semaphore_mem>>
    %63 = tpu.memref_squeeze %62 : memref<1x!tpu.dma_semaphore, #tpu.memory_space<semaphore_mem>> -> memref<!tpu.dma_semaphore, #tpu.memory_space<semaphore_mem>>
    tpu.enqueue_dma source(%60 : memref<1x128xf32, #tpu.memory_space<any>>) target(%61 : memref<1x128xf32, #tpu.memory_space<vmem>>) target_semaphore(%63 : memref<!tpu.dma_semaphore, #tpu.memory_space<semaphore_mem>>)
    %c7_i32 = arith.constant 7 : i32
    %64 = arith.addi %0, %c7_i32 : i32
    %65 = arith.index_cast %64 : i32 to index
    %66 = memref.load %arg1[%65] : memref<16xi32, #tpu.memory_space<smem>>
    %c0_i32_27 = arith.constant 0 : i32
    %c31_i32_28 = arith.constant 31 : i32
    %67 = arith.maxsi %c0_i32_27, %66 : i32
    %68 = arith.minsi %c31_i32_28, %67 : i32
    %c0_i32_29 = arith.constant 0 : i32
    %69 = tpu.memref_slice %arg7[%68, %c0_i32_29] : memref<32x128xf32, #tpu.memory_space<any>> -> memref<1x128xf32, #tpu.memory_space<any>>
    %c0_i32_30 = arith.constant 0 : i32
    %70 = tpu.memref_slice %arg9[%c7_i32, %c0_i32_30] : memref<8x128xf32, #tpu.memory_space<vmem>> -> memref<1x128xf32, #tpu.memory_space<vmem>>
    %71 = tpu.memref_slice %arg10[%c7_i32] : memref<8x!tpu.dma_semaphore, #tpu.memory_space<semaphore_mem>> -> memref<1x!tpu.dma_semaphore, #tpu.memory_space<semaphore_mem>>
    %72 = tpu.memref_squeeze %71 : memref<1x!tpu.dma_semaphore, #tpu.memory_space<semaphore_mem>> -> memref<!tpu.dma_semaphore, #tpu.memory_space<semaphore_mem>>
    tpu.enqueue_dma source(%69 : memref<1x128xf32, #tpu.memory_space<any>>) target(%70 : memref<1x128xf32, #tpu.memory_space<vmem>>) target_semaphore(%72 : memref<!tpu.dma_semaphore, #tpu.memory_space<semaphore_mem>>)
    %c8_i32_31 = arith.constant 8 : i32
    %c0 = arith.constant 0 : index
    %c0_32 = arith.constant 0 : index
    %c0_33 = arith.constant 0 : index
    %73 = vector.load %arg2[%c0, %c0_32, %c0_33] : memref<1x8x1xi32, #tpu.memory_space<vmem>>, vector<1x8x1xi32>
    %74 = vector.shape_cast %73 : vector<1x8x1xi32> to vector<8x1xi32>
    %c0_i32_34 = arith.constant 0 : i32
    %75 = vector.broadcast %c0_i32_34 : i32 to vector<8x1xi32>
    %76 = arith.cmpi ne, %74, %75 : vector<8x1xi32>
    %77 = arith.extui %76 : vector<8x1xi1> to vector<8x1xi32>
    %78 = arith.sitofp %77 : vector<8x1xi32> to vector<8x1xf32>
    %c0_35 = arith.constant 0 : index
    %c0_36 = arith.constant 0 : index
    %79 = vector.load %arg4[%c0_35, %c0_36] : memref<2x128xf32, #tpu.memory_space<vmem>>, vector<1x128xf32>
    %c1 = arith.constant 1 : index
    %c0_37 = arith.constant 0 : index
    %80 = vector.load %arg4[%c1, %c0_37] : memref<2x128xf32, #tpu.memory_space<vmem>>, vector<1x128xf32>
    %c0_38 = arith.constant 0 : index
    %c0_39 = arith.constant 0 : index
    %81 = vector.load %arg4[%c0_38, %c0_39] : memref<2x128xf32, #tpu.memory_space<vmem>>, vector<1x128xf32>
    %82 = arith.subf %80, %81 : vector<1x128xf32>
    %83 = vector.broadcast %78 : vector<8x1xf32> to vector<8x128xf32>
    %84 = vector.broadcast %82 : vector<1x128xf32> to vector<8x128xf32>
    %85 = arith.mulf %83, %84 : vector<8x128xf32>
    %86 = vector.broadcast %79 : vector<1x128xf32> to vector<8x128xf32>
    %87 = arith.addf %86, %85 : vector<8x128xf32>
    %c0_40 = arith.constant 0 : index
    %c0_41 = arith.constant 0 : index
    %88 = vector.load %arg3[%c0_40, %c0_41] : memref<8x128xf32, #tpu.memory_space<vmem>>, vector<8x128xf32>
    %89 = arith.addf %88, %87 : vector<8x128xf32>
    %c0_i32_42 = arith.constant 0 : i32
    %c0_i32_43 = arith.constant 0 : i32
    %c0_i32_44 = arith.constant 0 : i32
    %90 = tpu.memref_slice %arg7[%c0_i32_43, %c0_i32_44] : memref<32x128xf32, #tpu.memory_space<any>> -> memref<1x128xf32, #tpu.memory_space<any>>
    %c0_i32_45 = arith.constant 0 : i32
    %91 = tpu.memref_slice %arg9[%c0_i32_42, %c0_i32_45] : memref<8x128xf32, #tpu.memory_space<vmem>> -> memref<1x128xf32, #tpu.memory_space<vmem>>
    %92 = tpu.memref_slice %arg10[%c0_i32_42] : memref<8x!tpu.dma_semaphore, #tpu.memory_space<semaphore_mem>> -> memref<1x!tpu.dma_semaphore, #tpu.memory_space<semaphore_mem>>
    %93 = tpu.memref_squeeze %92 : memref<1x!tpu.dma_semaphore, #tpu.memory_space<semaphore_mem>> -> memref<!tpu.dma_semaphore, #tpu.memory_space<semaphore_mem>>
    tpu.wait_dma2 semaphore(%93 : memref<!tpu.dma_semaphore, #tpu.memory_space<semaphore_mem>>) src(%90 : memref<1x128xf32, #tpu.memory_space<any>>) dst(%91 : memref<1x128xf32, #tpu.memory_space<vmem>>)
    %c1_i32_46 = arith.constant 1 : i32
    %c0_i32_47 = arith.constant 0 : i32
    %c0_i32_48 = arith.constant 0 : i32
    %94 = tpu.memref_slice %arg7[%c0_i32_47, %c0_i32_48] : memref<32x128xf32, #tpu.memory_space<any>> -> memref<1x128xf32, #tpu.memory_space<any>>
    %c0_i32_49 = arith.constant 0 : i32
    %95 = tpu.memref_slice %arg9[%c1_i32_46, %c0_i32_49] : memref<8x128xf32, #tpu.memory_space<vmem>> -> memref<1x128xf32, #tpu.memory_space<vmem>>
    %96 = tpu.memref_slice %arg10[%c1_i32_46] : memref<8x!tpu.dma_semaphore, #tpu.memory_space<semaphore_mem>> -> memref<1x!tpu.dma_semaphore, #tpu.memory_space<semaphore_mem>>
    %97 = tpu.memref_squeeze %96 : memref<1x!tpu.dma_semaphore, #tpu.memory_space<semaphore_mem>> -> memref<!tpu.dma_semaphore, #tpu.memory_space<semaphore_mem>>
    tpu.wait_dma2 semaphore(%97 : memref<!tpu.dma_semaphore, #tpu.memory_space<semaphore_mem>>) src(%94 : memref<1x128xf32, #tpu.memory_space<any>>) dst(%95 : memref<1x128xf32, #tpu.memory_space<vmem>>)
    %c2_i32_50 = arith.constant 2 : i32
    %c0_i32_51 = arith.constant 0 : i32
    %c0_i32_52 = arith.constant 0 : i32
    %98 = tpu.memref_slice %arg7[%c0_i32_51, %c0_i32_52] : memref<32x128xf32, #tpu.memory_space<any>> -> memref<1x128xf32, #tpu.memory_space<any>>
    %c0_i32_53 = arith.constant 0 : i32
    %99 = tpu.memref_slice %arg9[%c2_i32_50, %c0_i32_53] : memref<8x128xf32, #tpu.memory_space<vmem>> -> memref<1x128xf32, #tpu.memory_space<vmem>>
    %100 = tpu.memref_slice %arg10[%c2_i32_50] : memref<8x!tpu.dma_semaphore, #tpu.memory_space<semaphore_mem>> -> memref<1x!tpu.dma_semaphore, #tpu.memory_space<semaphore_mem>>
    %101 = tpu.memref_squeeze %100 : memref<1x!tpu.dma_semaphore, #tpu.memory_space<semaphore_mem>> -> memref<!tpu.dma_semaphore, #tpu.memory_space<semaphore_mem>>
    tpu.wait_dma2 semaphore(%101 : memref<!tpu.dma_semaphore, #tpu.memory_space<semaphore_mem>>) src(%98 : memref<1x128xf32, #tpu.memory_space<any>>) dst(%99 : memref<1x128xf32, #tpu.memory_space<vmem>>)
    %c3_i32_54 = arith.constant 3 : i32
    %c0_i32_55 = arith.constant 0 : i32
    %c0_i32_56 = arith.constant 0 : i32
    %102 = tpu.memref_slice %arg7[%c0_i32_55, %c0_i32_56] : memref<32x128xf32, #tpu.memory_space<any>> -> memref<1x128xf32, #tpu.memory_space<any>>
    %c0_i32_57 = arith.constant 0 : i32
    %103 = tpu.memref_slice %arg9[%c3_i32_54, %c0_i32_57] : memref<8x128xf32, #tpu.memory_space<vmem>> -> memref<1x128xf32, #tpu.memory_space<vmem>>
    %104 = tpu.memref_slice %arg10[%c3_i32_54] : memref<8x!tpu.dma_semaphore, #tpu.memory_space<semaphore_mem>> -> memref<1x!tpu.dma_semaphore, #tpu.memory_space<semaphore_mem>>
    %105 = tpu.memref_squeeze %104 : memref<1x!tpu.dma_semaphore, #tpu.memory_space<semaphore_mem>> -> memref<!tpu.dma_semaphore, #tpu.memory_space<semaphore_mem>>
    tpu.wait_dma2 semaphore(%105 : memref<!tpu.dma_semaphore, #tpu.memory_space<semaphore_mem>>) src(%102 : memref<1x128xf32, #tpu.memory_space<any>>) dst(%103 : memref<1x128xf32, #tpu.memory_space<vmem>>)
    %c4_i32_58 = arith.constant 4 : i32
    %c0_i32_59 = arith.constant 0 : i32
    %c0_i32_60 = arith.constant 0 : i32
    %106 = tpu.memref_slice %arg7[%c0_i32_59, %c0_i32_60] : memref<32x128xf32, #tpu.memory_space<any>> -> memref<1x128xf32, #tpu.memory_space<any>>
    %c0_i32_61 = arith.constant 0 : i32
    %107 = tpu.memref_slice %arg9[%c4_i32_58, %c0_i32_61] : memref<8x128xf32, #tpu.memory_space<vmem>> -> memref<1x128xf32, #tpu.memory_space<vmem>>
    %108 = tpu.memref_slice %arg10[%c4_i32_58] : memref<8x!tpu.dma_semaphore, #tpu.memory_space<semaphore_mem>> -> memref<1x!tpu.dma_semaphore, #tpu.memory_space<semaphore_mem>>
    %109 = tpu.memref_squeeze %108 : memref<1x!tpu.dma_semaphore, #tpu.memory_space<semaphore_mem>> -> memref<!tpu.dma_semaphore, #tpu.memory_space<semaphore_mem>>
    tpu.wait_dma2 semaphore(%109 : memref<!tpu.dma_semaphore, #tpu.memory_space<semaphore_mem>>) src(%106 : memref<1x128xf32, #tpu.memory_space<any>>) dst(%107 : memref<1x128xf32, #tpu.memory_space<vmem>>)
    %c5_i32_62 = arith.constant 5 : i32
    %c0_i32_63 = arith.constant 0 : i32
    %c0_i32_64 = arith.constant 0 : i32
    %110 = tpu.memref_slice %arg7[%c0_i32_63, %c0_i32_64] : memref<32x128xf32, #tpu.memory_space<any>> -> memref<1x128xf32, #tpu.memory_space<any>>
    %c0_i32_65 = arith.constant 0 : i32
    %111 = tpu.memref_slice %arg9[%c5_i32_62, %c0_i32_65] : memref<8x128xf32, #tpu.memory_space<vmem>> -> memref<1x128xf32, #tpu.memory_space<vmem>>
    %112 = tpu.memref_slice %arg10[%c5_i32_62] : memref<8x!tpu.dma_semaphore, #tpu.memory_space<semaphore_mem>> -> memref<1x!tpu.dma_semaphore, #tpu.memory_space<semaphore_mem>>
    %113 = tpu.memref_squeeze %112 : memref<1x!tpu.dma_semaphore, #tpu.memory_space<semaphore_mem>> -> memref<!tpu.dma_semaphore, #tpu.memory_space<semaphore_mem>>
    tpu.wait_dma2 semaphore(%113 : memref<!tpu.dma_semaphore, #tpu.memory_space<semaphore_mem>>) src(%110 : memref<1x128xf32, #tpu.memory_space<any>>) dst(%111 : memref<1x128xf32, #tpu.memory_space<vmem>>)
    %c6_i32_66 = arith.constant 6 : i32
    %c0_i32_67 = arith.constant 0 : i32
    %c0_i32_68 = arith.constant 0 : i32
    %114 = tpu.memref_slice %arg7[%c0_i32_67, %c0_i32_68] : memref<32x128xf32, #tpu.memory_space<any>> -> memref<1x128xf32, #tpu.memory_space<any>>
    %c0_i32_69 = arith.constant 0 : i32
    %115 = tpu.memref_slice %arg9[%c6_i32_66, %c0_i32_69] : memref<8x128xf32, #tpu.memory_space<vmem>> -> memref<1x128xf32, #tpu.memory_space<vmem>>
    %116 = tpu.memref_slice %arg10[%c6_i32_66] : memref<8x!tpu.dma_semaphore, #tpu.memory_space<semaphore_mem>> -> memref<1x!tpu.dma_semaphore, #tpu.memory_space<semaphore_mem>>
    %117 = tpu.memref_squeeze %116 : memref<1x!tpu.dma_semaphore, #tpu.memory_space<semaphore_mem>> -> memref<!tpu.dma_semaphore, #tpu.memory_space<semaphore_mem>>
    tpu.wait_dma2 semaphore(%117 : memref<!tpu.dma_semaphore, #tpu.memory_space<semaphore_mem>>) src(%114 : memref<1x128xf32, #tpu.memory_space<any>>) dst(%115 : memref<1x128xf32, #tpu.memory_space<vmem>>)
    %c7_i32_70 = arith.constant 7 : i32
    %c0_i32_71 = arith.constant 0 : i32
    %c0_i32_72 = arith.constant 0 : i32
    %118 = tpu.memref_slice %arg7[%c0_i32_71, %c0_i32_72] : memref<32x128xf32, #tpu.memory_space<any>> -> memref<1x128xf32, #tpu.memory_space<any>>
    %c0_i32_73 = arith.constant 0 : i32
    %119 = tpu.memref_slice %arg9[%c7_i32_70, %c0_i32_73] : memref<8x128xf32, #tpu.memory_space<vmem>> -> memref<1x128xf32, #tpu.memory_space<vmem>>
    %120 = tpu.memref_slice %arg10[%c7_i32_70] : memref<8x!tpu.dma_semaphore, #tpu.memory_space<semaphore_mem>> -> memref<1x!tpu.dma_semaphore, #tpu.memory_space<semaphore_mem>>
    %121 = tpu.memref_squeeze %120 : memref<1x!tpu.dma_semaphore, #tpu.memory_space<semaphore_mem>> -> memref<!tpu.dma_semaphore, #tpu.memory_space<semaphore_mem>>
    tpu.wait_dma2 semaphore(%121 : memref<!tpu.dma_semaphore, #tpu.memory_space<semaphore_mem>>) src(%118 : memref<1x128xf32, #tpu.memory_space<any>>) dst(%119 : memref<1x128xf32, #tpu.memory_space<vmem>>)
    %c8_i32_74 = arith.constant 8 : i32
    %c0_75 = arith.constant 0 : index
    %c0_76 = arith.constant 0 : index
    %122 = vector.load %arg9[%c0_75, %c0_76] : memref<8x128xf32, #tpu.memory_space<vmem>>, vector<8x128xf32>
    %123 = arith.addf %122, %89 : vector<8x128xf32>
    %124 = tpu.iota {dimensions = array<i32: 1>} : vector<8x128xi32>
    %c32_i32 = arith.constant 32 : i32
    %125 = vector.broadcast %c32_i32 : i32 to vector<8x128xi32>
    %126 = arith.cmpi slt, %124, %125 : vector<8x128xi32>
    %cst = arith.constant dense<0.000000e+00> : vector<8xf32>
    %127 = vector.multi_reduction <add>, %123, %cst [1] : vector<8x128xf32> to vector<8xf32>
    %128 = vector.shape_cast %127 : vector<8xf32> to vector<8x1xf32>
    %cst_77 = arith.constant 3.125000e-02 : f32
    %129 = vector.broadcast %cst_77 : f32 to vector<8x1xf32>
    %130 = arith.mulf %128, %129 : vector<8x1xf32>
    %131 = vector.broadcast %130 : vector<8x1xf32> to vector<8x128xf32>
    %132 = arith.subf %123, %131 : vector<8x128xf32>
    %cst_78 = arith.constant 0.000000e+00 : f32
    %133 = vector.broadcast %cst_78 : f32 to vector<8x128xf32>
    %134 = arith.select %126, %132, %133 : vector<8x128xi1>, vector<8x128xf32>
    %135 = arith.mulf %134, %134 : vector<8x128xf32>
    %cst_79 = arith.constant dense<0.000000e+00> : vector<8xf32>
    %136 = vector.multi_reduction <add>, %135, %cst_79 [1] : vector<8x128xf32> to vector<8xf32>
    %137 = vector.shape_cast %136 : vector<8xf32> to vector<8x1xf32>
    %cst_80 = arith.constant 3.125000e-02 : f32
    %138 = vector.broadcast %cst_80 : f32 to vector<8x1xf32>
    %139 = arith.mulf %137, %138 : vector<8x1xf32>
    %cst_81 = arith.constant 9.99999974E-6 : f32
    %140 = vector.broadcast %cst_81 : f32 to vector<8x1xf32>
    %141 = arith.addf %139, %140 : vector<8x1xf32>
    %142 = math.rsqrt %141 : vector<8x1xf32>
    %143 = vector.broadcast %142 : vector<8x1xf32> to vector<8x128xf32>
    %144 = arith.mulf %134, %143 : vector<8x128xf32>
    %c0_82 = arith.constant 0 : index
    %c0_83 = arith.constant 0 : index
    %145 = vector.load %arg5[%c0_82, %c0_83] : memref<1x128xf32, #tpu.memory_space<vmem>>, vector<1x128xf32>
    %146 = vector.broadcast %145 : vector<1x128xf32> to vector<8x128xf32>
    %147 = arith.mulf %144, %146 : vector<8x128xf32>
    %c0_84 = arith.constant 0 : index
    %c0_85 = arith.constant 0 : index
    %148 = vector.load %arg6[%c0_84, %c0_85] : memref<1x128xf32, #tpu.memory_space<vmem>>, vector<1x128xf32>
    %149 = vector.broadcast %148 : vector<1x128xf32> to vector<8x128xf32>
    %150 = arith.addf %147, %149 : vector<8x128xf32>
    %c0_86 = arith.constant 0 : index
    %c0_87 = arith.constant 0 : index
    %c0_88 = arith.constant 0 : index
    %151 = vector.load %arg8[%c0_86, %c0_87, %c0_88] : memref<1x8x128xf32, #tpu.memory_space<vmem>>, vector<1x8x128xf32>
    %152 = vector.shape_cast %151 : vector<1x8x128xf32> to vector<8x128xf32>
    %153 = vector.shape_cast %150 : vector<8x128xf32> to vector<1x8x128xf32>
    tpu.vector_store %arg8[%c0_86, %c0_87, %c0_88], %153 {strides = array<i32>} : memref<1x8x128xf32, #tpu.memory_space<vmem>>, vector<1x8x128xf32>,
    return
  }
  func.func @transform_0(%arg0: i32, %arg1: memref<16xi32, #tpu.memory_space<smem>>) -> (i32, i32, i32) {
    %c0_i32 = arith.constant 0 : i32
    %c0_i32_0 = arith.constant 0 : i32
    %c0_i32_1 = arith.constant 0 : i32
    return %arg0, %c0_i32, %c0_i32_0 : i32, i32, i32
  }
  func.func @transform_1(%arg0: i32, %arg1: memref<16xi32, #tpu.memory_space<smem>>) -> (i32, i32) {
    %c0_i32 = arith.constant 0 : i32
    %c0_i32_0 = arith.constant 0 : i32
    %c0_i32_1 = arith.constant 0 : i32
    return %c0_i32, %c0_i32_0 : i32, i32
  }
  func.func @transform_2(%arg0: i32, %arg1: memref<16xi32, #tpu.memory_space<smem>>) -> (i32, i32) {
    %c0_i32 = arith.constant 0 : i32
    %c0_i32_0 = arith.constant 0 : i32
    %c0_i32_1 = arith.constant 0 : i32
    return %c0_i32, %c0_i32_0 : i32, i32
  }
  func.func @transform_3(%arg0: i32, %arg1: memref<16xi32, #tpu.memory_space<smem>>) -> (i32, i32) {
    %c0_i32 = arith.constant 0 : i32
    %c0_i32_0 = arith.constant 0 : i32
    %c0_i32_1 = arith.constant 0 : i32
    return %c0_i32, %c0_i32_0 : i32, i32
  }
  func.func @transform_4(%arg0: i32, %arg1: memref<16xi32, #tpu.memory_space<smem>>) -> (i32, i32) {
    %c0_i32 = arith.constant 0 : i32
    %c0_i32_0 = arith.constant 0 : i32
    %c0_i32_1 = arith.constant 0 : i32
    return %c0_i32, %c0_i32_0 : i32, i32
  }
  func.func @transform_6(%arg0: i32, %arg1: memref<16xi32, #tpu.memory_space<smem>>) -> (i32, i32, i32) {
    %c0_i32 = arith.constant 0 : i32
    %c0_i32_0 = arith.constant 0 : i32
    %c0_i32_1 = arith.constant 0 : i32
    return %arg0, %c0_i32, %c0_i32_0 : i32, i32, i32
  }
}

</mosaic_0001>

<bundles_post_ra>
// kernel: tpu_custom_call.1
= control target key start
LH: loop header
LB: loop body
LE: loop exit
PB: predicated region body
PF: predicated region fallthrough
CT: control target
= control target key end

     0   :  { %s1482_s0 = inlined_call_operand.vmem [shape: s32[16], index: 0, kind: input, shape index: {}]   ;;  %s1483_s1 = inlined_call_operand.vmem [shape: s32[2,8,1], index: 1, kind: input, shape index: {}]   ;;  %s1484_s2 = inlined_call_operand.hbm [shape: f32[16,128], index: 2, kind: input, shape index: {}]   ;;  %s1485_s3 = inlined_call_operand.vmem [shape: f32[2,128], index: 3, kind: input, shape index: {}]   ;;  %s1486_s4 = inlined_call_operand.vmem [shape: f32[1,128], index: 4, kind: input, shape index: {}]   ;;  %s1487_s5 = inlined_call_operand.vmem [shape: f32[1,128], index: 5, kind: input, shape index: {}]   ;;  %s1488_s6 = inlined_call_operand.vmem [shape: f32[32,128], index: 6, kind: input, shape index: {}]   ;;  %s1489_s7 = inlined_call_operand.hbm [shape: f32[2,8,128], index: 7, kind: output, shape index: {}]  }
   0x1   :  { %s12_s26 = sshll.u32 %s1482_s0, 4  ;;  %s13_s26 = int_to_ptr.vmem [resolvable:$true] %s12_s26 }
   0x2   :  { %s1109_s27 = scalar_lea.vmem %s13_s26, 16  ;;  %p1114_p1 = scmp.lt.s32.totalorder %s13_s26, %s13_s26 }
   0x3   :  { %p1110_p0 = scmp.ne.s32.totalorder %s13_s26, %s1109_s27  ;;  %p1115_p2 = scmp.lt.s32.totalorder %s1109_s27, %s1109_s27 }
   0x5   :  { %p1116_p3 = por %p1115_p2, %p1114_p1 }
   0x7   :  { %p1117_p4 = pnand %p1116_p3, %p1110_p0 }
   0x9   :  { %1120 = shalt.err (!%p1117_p4)  }
   0xa   :  { %s1235_s28 = smov [#allocation5]  }
   0xb   :  { %15 = dma.vmem_to_smem %s13_s26, 16, %s1235_s28, [#allocation4] }
   0xc   :  { %1193 = dma.done.wait [#allocation4], 16 }
   0xd   :  { %1194 = vsyncadd [#allocation4], 4294967280 }
   0xe   :  { %17 = sfence }
   0xf   :  { %18 = vsyncpa [#allocation7], 0 }
  0x10   :  { %19 = vsyncpa [#allocation8], 0 }
  0x11   :  { %21 = vsyncpa [#allocation8 + $0x1], 0  ;;  %s1283_s29 = smov 0   ;;  %s1285_s30 = smov 0  }
  0x12   :  { %s1287_s0 = smov 0   ;;  %s1289_s8 = smov 0  }
  0x13 LB: > { %s1304_s9 = sadd.s32 4294967295, %s1233_s8   ;;  %s973_s10 = sadd.s32 4294967294, %s1233_s8   ;;  %s1233_s8 = sphi %s1289_s8, %s1505_s8   ;;  %s1229_s0 = sphi %s1287_s0, %s1504_s0   ;;  %s1225_s30 = sphi %s1285_s30, %s1503_s30   ;;  %s1221_s29 = sphi %s1283_s29, %s1502_s29  }
  0x14   : > { %s1308_s11 = sadd.s32 1, %s1233_s8   ;;  %s144_s12 = sadd.s32 1, %s1229_s0 }
  0x15   : > { %s141_s13 = ssub.s32 %s1233_s8, %s1308_s11  ;;  %p154_p5 = scmp.ne.s32.totalorder %s1229_s0, %s1225_s30 }
  0x16   : > { %p142_p6 = scmp.eq.s32.totalorder %s141_s13, 0  ;;  %p155_p7 = scmp.eq.s32.totalorder %s1304_s9, 1 }
  0x17   : > { %p160_p8 = scmp.ne.s32.totalorder %s1225_s30, %s1221_s29  ;;  %p161_p9 = scmp.eq.s32.totalorder %s973_s10, 1 }
  0x18   : > { %s1319_s14 = scalar_select %p142_p6, %s1229_s0, %s144_s12  }
  0x19   : > { %p1321_p10 = por %p155_p7, %p154_p5  ;;  %p1325_p11 = por %p161_p9, %p160_p8 }
  0x1a   : > { %p974_p12 = scmp.ge.s32.totalorder %s1233_s8, 1  ;;  %p168_p13 = scmp.lt.s32.totalorder %s1233_s8, 3 }
  0x1b   : > { %s1493_s15 = scalar_select %p1321_p10, 1, 0 }
  0x1c   : > { %s1494_s16 = scalar_select %p1325_p11, 1, 0 }
  0x1d   : > { %p1490_p0 = scmp.eq.s32.totalorder %s1304_s9, 0  ;;  %p1332_p1 = pnand %p974_p12, %p168_p13 }
  0x1e   : > { %s1236_s18 = smov [#allocation6]   ;;  %s1121_s23 = scalar_lea.hbm %s1484_s2, 128 }
  0x1f   : > { %s1495_s17 = scalar_select %p1332_p1, 1, 0 }
  0x20   : > { %s181_s19 = sshll.u32 %s1236_s18, 4  ;;  %p1059_p2 = pneg %p1332_p1  ;;  %s182_s19 = int_to_ptr.vmem [resolvable:$true] %s181_s19 }
  0x21   : > { %p1122_p4 = scmp.ne.s32.totalorder %s1484_s2, %s1121_s23  ;;  %s1126_s28 = scalar_lea.hbm %s1484_s2, 256 }
  0x22   : > { %p1340_p3 = pnand %p1490_p0, %p1059_p2  ;;  %p1127_p8 = scmp.lt.u32.totalorder %s1126_s28, %s1121_s23 }
  0x23   : > { %p1128_p9 = scmp.lt.u32.totalorder %s1121_s23, %s1484_s2 }
  0x24   : > { %p1123_p5 = pneg %p1340_p3 }
  0x25   : > { %p1129_p12 = por %p1128_p9, %p1127_p8 }
  0x26   : > { %p1124_p6 = pnand %p1123_p5, %p1122_p4 }
  0x28   : > { %p1125_p7 = pneg %p1124_p6 }
  0x2a   : > { %p1130_p13 = pnand %p1129_p12, %p1125_p7 }
  0x2c   : > { %1133 = shalt.err (!%p1130_p13)
}
  0x2d   : > { %s1134_s13 = scalar_lea.vmem %s182_s19, 128  ;;  %p1142_p10 = scmp.lt.s32.totalorder %s182_s19, %s182_s19 }
  0x2e   : > { %p1135_p2 = scmp.ne.s32.totalorder %s182_s19, %s1134_s13  ;;  %p1143_p1 = scmp.lt.s32.totalorder %s1134_s13, %s1134_s13 }
  0x30   : > { %p1137_p0 = pnand %p1135_p2, %p1123_p5  ;;  %p1144_p4 = por %p1143_p1, %p1142_p10 }
  0x32   : > { %p1138_p11 = pneg %p1137_p0 }
  0x34   : > { %p1145_p6 = pnand %p1144_p4, %p1138_p11 }
  0x36   : > { %1148 = shalt.err (!%p1145_p6)
}
  0x37   : > { %1062 = dma.hbm_to_vmem [thread:$0]  (!%p1340_p3), %s1484_s2, 128, %s182_s19, [#allocation7]  }
  0x38   : > { %p1497_p8 = scmp.ne.s32.totalorder %s1495_s17, 0 }
  0x39   : > { %p1498_p7 = scmp.eq.s32.totalorder (!%p1497_p8), %s1304_s9, 0 }
  0x3a   : > { %210 = sbr.rel (%p1497_p8) target bundleno = 657 (0x291), region = 40 }
  0x41   : > { %1196 = dma.done.wait (%p1498_p7), [#allocation7], 128   ;;  %p1499_p5 = pmov %p1498_p7 }
  0x42   : > { %s1370_s22 = sshll.u32 %s1304_s9, 3  ;;  %s234_s20 = sand.u32 1, %s1225_s30  }
  0x43   : > { %1198 = vsyncadd (%p1499_p5), [#allocation7], 4294967168  ;;  %s242_s23 = sld [smem:[#allocation5 + %s1370_s22]]  ;;  %s1376_s19 = sshll.u32 %s234_s20, 3 }
  0x44   : > { %p237_p10 = scmp.lt.s32.totalorder %s1304_s9, 1  ;;  %s236_s13 = scalar_lea.vmem [#allocation9], %s1376_s19 }
  0x46   : > { %s238_s17 = scalar_select %p237_p10, %s1304_s9, 1 }
  0x48   : > { %s980_s24 = sshll.u32 %s238_s17, 3 }
  0x49   : > { %s1383_s27 = scalar_lea.vmem %s1483_s1, %s980_s24  ;;  %p243_p11 = scmp.gt.s32.totalorder %s242_s23, 0 }
  0x4a   : > { %p982_p0 = scmp.lt.s32.totalorder %s242_s23, 31 }
  0x4b   : > { %s1507_s23 = smov (!%p243_p11, %s242_s23), 0 }
  0x4c   : > { %s1509_s23 = smov (!%p982_p0, %s1507_s23), 31 }
  0x4d   : > { %s247_s12 = scalar_lea.vmem %s1488_s6, %s1509_s23 }
  0x4e   : > { %v265_v0 = vld [vmem:[%s247_s12] sm:$0x1] }
  0x4f   : > { %266 = vst [vmem:[#allocation2] sm:$0x1] %v265_v0 }
  0x50   : > { %291 = vsyncadd [#allocation3], 16  ;;  %s292_s18 = sadd.s32 1, %s1370_s22 }
  0x51   : > { %s293_s21 = sld [smem:[#allocation5 + %s292_s18]] }
  0x57   : > { %p294_p1 = scmp.gt.s32.totalorder %s293_s21, 0  ;;  %p987_p3 = scmp.lt.s32.totalorder %s293_s21, 31 }
  0x59   : > { %s1511_s21 = smov (!%p294_p1, %s293_s21), 0 }
  0x5a   : > { %s1513_s21 = smov (!%p987_p3, %s1511_s21), 31 }
  0x5b   : > { %s298_s25 = scalar_lea.vmem %s1488_s6, %s1513_s21 }
  0x5c   : > { %v318_v1 = vld [vmem:[%s298_s25] sm:$0x1] }
  0x5d   : > { %319 = vst [vmem:[#allocation2 + $0x1] sm:$0x1] %v318_v1 }
  0x5e   : > { %344 = vsyncadd [#allocation3 + $0x1], 16  ;;  %s345_s23 = sadd.s32 2, %s1370_s22 }
  0x5f   : > { %s346_s26 = sld [smem:[#allocation5 + %s345_s23]] }
  0x65   : > { %p347_p9 = scmp.gt.s32.totalorder %s346_s26, 0  ;;  %p992_p12 = scmp.lt.s32.totalorder %s346_s26, 31 }
  0x67   : > { %s1515_s26 = smov (!%p347_p9, %s346_s26), 0 }
  0x68   : > { %s1517_s26 = smov (!%p992_p12, %s1515_s26), 31 }
  0x69   : > { %s351_s12 = scalar_lea.vmem %s1488_s6, %s1517_s26 }
  0x6a   : > { %v371_v2 = vld [vmem:[%s351_s12] sm:$0x1] }
  0x6b   : > { %372 = vst [vmem:[#allocation2 + $0x2] sm:$0x1] %v371_v2 }
  0x6c   : > { %397 = vsyncadd [#allocation3 + $0x2], 16  ;;  %s398_s18 = sadd.s32 3, %s1370_s22 }
  0x6d   : > { %s399_s21 = sld [smem:[#allocation5 + %s398_s18]] }
  0x73   : > { %p400_p13 = scmp.gt.s32.totalorder %s399_s21, 0  ;;  %p997_p2 = scmp.lt.s32.totalorder %s399_s21, 31 }
  0x75   : > { %s1519_s21 = smov (!%p400_p13, %s399_s21), 0 }
  0x76   : > { %s1521_s21 = smov (!%p997_p2, %s1519_s21), 31 }
  0x77   : > { %s404_s25 = scalar_lea.vmem %s1488_s6, %s1521_s21 }
  0x78   : > { %v424_v3 = vld [vmem:[%s404_s25] sm:$0x1] }
  0x79   : > { %425 = vst [vmem:[#allocation2 + $0x3] sm:$0x1] %v424_v3 }
  0x7a   : > { %450 = vsyncadd [#allocation3 + $0x3], 16  ;;  %s451_s23 = sadd.s32 4, %s1370_s22 }
  0x7b   : > { %s452_s26 = sld [smem:[#allocation5 + %s451_s23]] }
  0x81   : > { %p453_p4 = scmp.gt.s32.totalorder %s452_s26, 0  ;;  %p1002_p6 = scmp.lt.s32.totalorder %s452_s26, 31 }
  0x83   : > { %s1523_s26 = smov (!%p453_p4, %s452_s26), 0 }
  0x84   : > { %s1525_s26 = smov (!%p1002_p6, %s1523_s26), 31 }
  0x85   : > { %s457_s12 = scalar_lea.vmem %s1488_s6, %s1525_s26 }
  0x86   : > { %v477_v4 = vld [vmem:[%s457_s12] sm:$0x1] }
  0x87   : > { %478 = vst [vmem:[#allocation2 + $0x4] sm:$0x1] %v477_v4 }
  0x88   : > { %503 = vsyncadd [#allocation3 + $0x4], 16  ;;  %s504_s18 = sadd.s32 5, %s1370_s22 }
  0x89   : > { %s505_s21 = sld [smem:[#allocation5 + %s504_s18]] }
  0x8f   : > { %p506_p8 = scmp.gt.s32.totalorder %s505_s21, 0  ;;  %p1007_p7 = scmp.lt.s32.totalorder %s505_s21, 31 }
  0x91   : > { %s1527_s21 = smov (!%p506_p8, %s505_s21), 0 }
  0x92   : > { %s1529_s21 = smov (!%p1007_p7, %s1527_s21), 31 }
  0x93   : > { %s510_s25 = scalar_lea.vmem %s1488_s6, %s1529_s21 }
  0x94   : > { %v530_v5 = vld [vmem:[%s510_s25] sm:$0x1] }
  0x95   : > { %531 = vst [vmem:[#allocation2 + $0x5] sm:$0x1] %v530_v5 }
  0x96   : > { %556 = vsyncadd [#allocation3 + $0x5], 16  ;;  %s557_s23 = sadd.s32 6, %s1370_s22 }
  0x97   : > { %s558_s26 = sld [smem:[#allocation5 + %s557_s23]] }
  0x9d   : > { %p559_p5 = scmp.gt.s32.totalorder %s558_s26, 0  ;;  %p1012_p10 = scmp.lt.s32.totalorder %s558_s26, 31 }
  0x9f   : > { %s1531_s26 = smov (!%p559_p5, %s558_s26), 0 }
  0xa0   : > { %s1533_s26 = smov (!%p1012_p10, %s1531_s26), 31 }
  0xa1   : > { %s563_s12 = scalar_lea.vmem %s1488_s6, %s1533_s26 }
  0xa2   : > { %v583_v6 = vld [vmem:[%s563_s12] sm:$0x1] }
  0xa3   : > { %584 = vst [vmem:[#allocation2 + $0x6] sm:$0x1] %v583_v6 }
  0xa4   : > { %609 = vsyncadd [#allocation3 + $0x6], 16  ;;  %s610_s18 = sadd.s32 7, %s1370_s22  ;;  %v663_v8 = vld [vmem:[%s1383_s27] sm:$0xff]  ;;  %v1237_v9 = vmov 0  }
  0xa5   : > { %s611_s21 = sld [smem:[#allocation5 + %s610_s18]]  ;;  %1106 = vset.pattern.permute.xlu0 %v1237_v9  ;;  %vm664_vm0 = vcmp.ne.s32.totalorder %v663_v8, 0 }
  0xab   : > { %p612_p11 = scmp.gt.s32.totalorder %s611_s21, 0  ;;  %p1017_p0 = scmp.lt.s32.totalorder %s611_s21, 31 }
  0xad   : > { %s1535_s21 = smov (!%p612_p11, %s611_s21), 0 }
  0xae   : > { %s1537_s21 = smov (!%p1017_p0, %s1535_s21), 31 }
  0xaf   : > { %s616_s25 = scalar_lea.vmem %s1488_s6, %s1537_s21 }
  0xb0   : > { %v636_v7 = vld [vmem:[%s616_s25] sm:$0x1] }
  0xb1   : > { %637 = vst [vmem:[#allocation2 + $0x7] sm:$0x1] %v636_v7 }
  0xb2   : > { %662 = vsyncadd [#allocation3 + $0x7], 16  ;;  %v1238_v10 = vmov 0.0   ;;  %v675_v12 = vlaneseq  ;;  %v667_v14 = vld [vmem:[%s1485_s3] sm:$0x1]  ;;  %v685_v22 = vld [vmem:[#allocation6] sm:$0xff] }
  0xb3   : > { %v1022_v11 = vsel %vm664_vm0, 1.0, %v1238_v10  ;;  %v668_v15 = vld [vmem:[%s1485_s3 + $0x1] sm:$0x1] }
  0xb4   : > { %672 = vperm.xlu0 %1106, %v1022_v11   ;;  %v676_v13 = vshrl.u32 %v675_v12, 7  ;;  %v669_v16 = vsub.f32 %v668_v15, %v667_v14 }
  0xb6   : > { %v677_v17 = vsub.s32 0, %v676_v13 }
  0xb8   : > { %v678_v18 = vrot.slane %v669_v16, %v677_v17  ;;  %v683_v19 = vrot.slane %v667_v14, %v677_v17 }
 0x133   : > { %v673_v20 = vpop.permute.xlu0 %672 }
 0x134   : > { %v679_v21 = vmul.f32 %v678_v18, %v673_v20 }
 0x136   : > { %v684_v23 = vadd.f32 %v683_v19, %v679_v21 }
 0x138   : > { %v686_v24 = vadd.f32 %v685_v22, %v684_v23 }
 0x139   : > { %1199 = dma.done.wait [#allocation3], 16 }
 0x13a   : > { %1200 = vsyncadd [#allocation3], 4294967280 }
 0x13b   : > { %1201 = dma.done.wait [#allocation3 + $0x1], 16 }
 0x13c   : > { %1202 = vsyncadd [#allocation3 + $0x1], 4294967280 }
 0x13d   : > { %1203 = dma.done.wait [#allocation3 + $0x2], 16 }
 0x13e   : > { %1204 = vsyncadd [#allocation3 + $0x2], 4294967280 }
 0x13f   : > { %1205 = dma.done.wait [#allocation3 + $0x3], 16 }
 0x140   : > { %1206 = vsyncadd [#allocation3 + $0x3], 4294967280 }
 0x141   : > { %1207 = dma.done.wait [#allocation3 + $0x4], 16 }
 0x142   : > { %1208 = vsyncadd [#allocation3 + $0x4], 4294967280 }
 0x143   : > { %1209 = dma.done.wait [#allocation3 + $0x5], 16 }
 0x144   : > { %1210 = vsyncadd [#allocation3 + $0x5], 4294967280 }
 0x145   : > { %1211 = dma.done.wait [#allocation3 + $0x6], 16 }
 0x146   : > { %1212 = vsyncadd [#allocation3 + $0x6], 4294967280 }
 0x147   : > { %1213 = dma.done.wait [#allocation3 + $0x7], 16 }
 0x148   : > { %1214 = vsyncadd [#allocation3 + $0x7], 4294967280  ;;  %v704_v25 = vld [vmem:[#allocation2] sm:$0xff]  ;;  %v707_v27 = vand.u32 127, %v675_v12  ;;  %s1026_s21 = sshll.u32 %s1304_s9, 7  ;;  %s752_s17 = sshll.u32 %s236_s13, 4  ;;  %s1438_s17 = int_to_ptr.vmem [resolvable:$true] %s752_s17 }
 0x149   : > { %v705_v26 = vadd.f32 %v704_v25, %v686_v24  ;;  %v1023_v37 = vld [vmem:[%s1486_s4] ss:$0 sm:$0xff]  ;;  %s1436_s22 = scalar_lea.hbm %s1489_s7, %s1026_s21  ;;  %s739_s23 = scalar_lea.sflag [#allocation8], %s234_s20 }
 0x14a   : > { %vm708_vm1 = vcmp.lt.s32.totalorder %v707_v27, 32  ;;  %v1024_v39 = vld [vmem:[%s1487_s5] ss:$0 sm:$0xff]  ;;  %s1149_s26 = scalar_lea.vmem %s1438_s17, 128  ;;  %p1500_p3 = scmp.ne.s32.totalorder %s1493_s15, 0 }
 0x14b   : > { %709 = vadd.xlane.f32.xlu0 %v705_v26  ;;  %p1150_p1 = scmp.ne.s32.totalorder %s1438_s17, %s1149_s26  ;;  %s1239_s9 = smov [#allocation9]  }
 0x14c   : > { %s1153_s28 = sshll.u32 %s1239_s9, 4  ;;  %s1154_s28 = int_to_ptr.vmem [resolvable:$false] %s1153_s28 }
 0x14d   : > { %p1151_p9 = pnand %p1150_p1, %p1500_p3  ;;  %s1155_s27 = scalar_lea.vmem %s1154_s28, 256 }
 0x14e   : > { %p1156_p13 = scmp.lt.s32.totalorder %s1438_s17, %s1154_s28  ;;  %p1157_p2 = scmp.lt.s32.totalorder %s1155_s27, %s1149_s26 }
 0x14f   : > { %p1152_p12 = pneg %p1151_p9 }
 0x150   : > { %p1158_p4 = por %p1157_p2, %p1156_p13 }
 0x152   : > { %p1159_p6 = pnand %p1158_p4, %p1152_p12 }
 0x1d8   : > { %v710_v28 = vpop.xlane.xlu0 %709 }
 0x1d9   : > { %v711_v29 = vmul.f32 0.03125, %v710_v28 }
 0x1db   : > { %v712_v30 = vsub.f32 %v705_v26, %v711_v29 }
 0x1dd   : > { %v713_v31 = vsel %vm708_vm1, %v712_v30, 0.0 }
 0x1de   : > { %v714_v32 = vmul.f32 %v713_v31, %v713_v31 }
 0x1e0   : > { %715 = vadd.xlane.f32.xlu0 %v714_v32 }
 0x26d   : > { %v716_v33 = vpop.xlane.xlu0 %715 }
 0x26e   : > { %v717_v34 = vmul.f32 0.03125, %v716_v33 }
 0x270   : > { %v718_v35 = vadd.f32 1e-05, %v717_v34 }
 0x272   : > { %1107 = vrsqrt.f32 %v718_v35 }
 0x27c   : > { %v1108_v36 = vpop.eup %1107 }
 0x27d   : > { %v720_v38 = vmul.f32 %v1108_v36, %v713_v31 }
 0x27f   : > { %v728_v40 = vmul.f32 %v1023_v37, %v720_v38 }
 0x281   : > { %v736_v41 = vadd.f32 %v1024_v39, %v728_v40 }
 0x283   : > { %737 = vst [vmem:[%s236_s13] sm:$0xff] %v736_v41 }
 0x284   : > { %1162 = shalt.err (!%p1159_p6)
}
 0x285   : > { %s1163_s20 = scalar_lea.hbm %s1436_s22, 128  ;;  %s1167_s10 = scalar_lea.hbm %s1489_s7, 256 }
 0x286   : > { %p1164_p8 = scmp.ne.s32.totalorder %s1436_s22, %s1163_s20  ;;  %p1168_p10 = scmp.lt.u32.totalorder %s1436_s22, %s1489_s7 }
 0x287   : > { %p1169_p11 = scmp.lt.u32.totalorder %s1167_s10, %s1163_s20  ;;  %p1171_p1 = scmp.lt.u32.totalorder %s1163_s20, %s1436_s22 }
 0x288   : > { %p1165_p7 = pnand %p1164_p8, %p1500_p3 }
 0x289   : > { %p1170_p0 = por %p1169_p11, %p1168_p10 }
 0x28a   : > { %p1166_p5 = pneg %p1165_p7 }
 0x28b   : > { %p1172_p9 = por %p1171_p1, %p1170_p0 }
 0x28d   : > { %p1173_p12 = pnand %p1172_p9, %p1166_p5 }
 0x28f   : > { %1176 = shalt.err (!%p1173_p12)
}
 0x290   : > { %1057 = dma.vmem_to_hbm [thread:$0]  (%p1500_p3), %s1438_s17, 128, %s1436_s22, %s739_s23  }
 0x291 PF: > { %p1069_p13 = scmp.ge.s32.totalorder %s1233_s8, 2  ;;  %s764_s21 = sand.u32 1, %s1221_s29  }
 0x292   : > { %p1501_p2 = scmp.ne.s32.totalorder %s1494_s16, 0  ;;  %s765_s24 = scalar_lea.sflag [#allocation8], %s764_s21 }
 0x294   : > { %p1064_p4 = pnand %p1069_p13, %p1501_p2 }
 0x296   : > { %1216 = dma.done.wait (!%p1064_p4), %s765_s24, 128  }
 0x297   : > { %1218 = vsyncadd (!%p1064_p4), %s765_s24, 4294967168  ;;  %p24_p6 = scmp.ge.s32.totalorder %s1308_s11, 4   ;;  %s1502_s29 = smov %s1225_s30 }
 0x298   : > { %s1503_s30 = smov %s1229_s0  ;;  %s1504_s0 = smov %s1319_s14 }
 0x299   : > { %s1505_s8 = smov %s1308_s11  ;;  %26 = sbr.rel (!%p24_p6) target bundleno = 19 (0x13), region = 429 }
 0x2a0   :  { %770 = vsyncpa [#allocation7], 1 }
 0x2a1   :  { %772 = vsyncpa [#allocation7 + $0x1], 1 }
 0x2a2   :  { %773 = vsyncpa [#allocation8], 1 }
 0x2a3   :  { %775 = vsyncpa [#allocation8 + $0x1], 1 }
 0x2a4   :  { %776 = vsyncmov [#allocation3] }
 0x2a7   :  { %s777_s8 = vpop.sfrf %776 }
 0x2a8   :  { %p1029_p3 = scmp.ne.s32.totalorder %s777_s8, 0 }
 0x2aa   :  { %781 = shalt.err (%p1029_p3)  }
 0x2ab   :  { %783 = vsyncmov [#allocation3 + $0x1] }
 0x2ae   :  { %s784_s15 = vpop.sfrf %783 }
 0x2af   :  { %p1030_p8 = scmp.ne.s32.totalorder %s784_s15, 0 }
 0x2b1   :  { %788 = shalt.err (%p1030_p8)  }
 0x2b2   :  { %790 = vsyncmov [#allocation3 + $0x2] }
 0x2b5   :  { %s791_s16 = vpop.sfrf %790 }
 0x2b6   :  { %p1031_p7 = scmp.ne.s32.totalorder %s791_s16, 0 }
 0x2b8   :  { %795 = shalt.err (%p1031_p7)  }
 0x2b9   :  { %797 = vsyncmov [#allocation3 + $0x3] }
 0x2bc   :  { %s798_s14 = vpop.sfrf %797 }
 0x2bd   :  { %p1032_p5 = scmp.ne.s32.totalorder %s798_s14, 0 }
 0x2bf   :  { %802 = shalt.err (%p1032_p5)  }
 0x2c0   :  { %804 = vsyncmov [#allocation3 + $0x4] }
 0x2c3   :  { %s805_s1 = vpop.sfrf %804 }
 0x2c4   :  { %p1033_p10 = scmp.ne.s32.totalorder %s805_s1, 0 }
 0x2c6   :  { %809 = shalt.err (%p1033_p10)  }
 0x2c7   :  { %811 = vsyncmov [#allocation3 + $0x5] }
 0x2ca   :  { %s812_s2 = vpop.sfrf %811 }
 0x2cb   :  { %p1034_p11 = scmp.ne.s32.totalorder %s812_s2, 0 }
 0x2cd   :  { %816 = shalt.err (%p1034_p11)  }
 0x2ce   :  { %818 = vsyncmov [#allocation3 + $0x6] }
 0x2d1   :  { %s819_s3 = vpop.sfrf %818 }
 0x2d2   :  { %p1035_p0 = scmp.ne.s32.totalorder %s819_s3, 0 }
 0x2d4   :  { %823 = shalt.err (%p1035_p0)  }
 0x2d5   :  { %825 = vsyncmov [#allocation3 + $0x7] }
 0x2d8   :  { %s826_s4 = vpop.sfrf %825 }
 0x2d9   :  { %p1036_p1 = scmp.ne.s32.totalorder %s826_s4, 0 }
 0x2db   :  { %830 = shalt.err (%p1036_p1)  }

</bundles_post_ra>
